<compile_context>
chip_gen: v5e
topology: v5e:2x2
jax: 0.10.0
libtpu: 0.0.40
codegen_flags: <defaults>
</compile_context>

<pallas_src>
import jax
import jax.numpy as jnp
from jax.experimental import pallas as pl
from jax.experimental.pallas import tpu as pltpu

EPS = 1e-5


def _round_up(x, m):
    return (x + m - 1) // m * m


# --------------------------------------------------------------------------
# Kernels
# --------------------------------------------------------------------------
def _cln_native_kernel(x_ref, w_ref, b_ref, o_ref):
    # x_ref/o_ref: (C, tile_f) ; w_ref/b_ref: (C, 1) -> broadcast over lanes.
    x = x_ref[...].astype(jnp.float32)
    inv_c = 1.0 / x.shape[0]
    # Fused one-pass statistics: sum(x) and sum(x*x) (both XLU sublane-reduces).
    mean = jnp.sum(x, axis=0, keepdims=True) * inv_c            # (1, tile_f)
    mean_sq = jnp.sum(x * x, axis=0, keepdims=True) * inv_c     # (1, tile_f)
    var = jnp.maximum(mean_sq - mean * mean, 0.0)               # masked-lane safe
    inv = jax.lax.rsqrt(var + EPS)                              # EUP
    w = w_ref[...].astype(jnp.float32)
    b = b_ref[...].astype(jnp.float32)
    o_ref[...] = ((x - mean) * inv * w + b).astype(o_ref.dtype)


def _cln_token_kernel(x_ref, w_ref, b_ref, o_ref):
    # x_ref/o_ref: (tile_n, C) ; w_ref/b_ref: (1, C) -> broadcast over sublanes.
    x = x_ref[...].astype(jnp.float32)
    inv_c = 1.0 / x.shape[-1]
    mean = jnp.sum(x, axis=-1, keepdims=True) * inv_c           # (tile_n, 1)
    mean_sq = jnp.sum(x * x, axis=-1, keepdims=True) * inv_c
    var = jnp.maximum(mean_sq - mean * mean, 0.0)
    inv = jax.lax.rsqrt(var + EPS)
    w = w_ref[...].astype(jnp.float32)
    b = b_ref[...].astype(jnp.float32)
    o_ref[...] = ((x - mean) * inv * w + b).astype(o_ref.dtype)


# --------------------------------------------------------------------------
# Tiling / VMEM bookkeeping
# --------------------------------------------------------------------------
def _vmem_limit_bytes():
    try:
        cap = int(pltpu.get_tpu_info().vmem_capacity_bytes)
    except Exception:
        cap = 64 * 1024 * 1024  # conservative: v7x per-TensorCore VMEM
    # 75% of physical, capped at 96 MiB: 48 MiB on v7x, 96 MiB on v5e/v6e.
    return int(min(cap * 3 // 4, 96 * 1024 * 1024))


def _choose_tile_f(B, C, F, itemsize, budget):
    # Bytes per lane-column of a (C, tile_f) block:
    #   2 (in+out) * 2 (double-buffer) * itemsize   -> pipelined I/O
    #   ~3 * 4 bytes                                -> in-kernel f32 temps
    bytes_per_col = C * (4 * itemsize + 12)
    max_tf = max(128, budget // bytes_per_col // 128 * 128)
    tile_f = min(max_tf, F)
    # Keep >= 4 grid steps when possible so the 2-deep pipeline overlaps DMA
    # with compute and the v7x megacore split gets >= 2 blocks per core.
    while B * pl.cdiv(F, tile_f) < 4 and tile_f >= 2048:
        tile_f = (tile_f // 2 + 127) // 128 * 128
    return tile_f


# --------------------------------------------------------------------------
# Wrappers
# --------------------------------------------------------------------------
def _cln_native(x, weight, bias, vmem_limit, tile_f):
    B, C, F = x.shape
    itemsize = jnp.dtype(x.dtype).itemsize

    # Budget = scoped-VMEM limit minus the (lane-padded, double-buffered)
    # weight/bias buffers and a 2 MiB margin for compiler-internal scratch.
    wb_bytes = 2 * 2 * _round_up(C, 8) * 128 * 4
    budget = max(vmem_limit - wb_bytes - 2 * 1024 * 1024, 1 << 20)
    if tile_f is None:
        tile_f = _choose_tile_f(B, C, F, itemsize, budget)
    tile_f = max(128, min(int(tile_f), F))
    if tile_f < F:
        tile_f = tile_f // 128 * 128  # lane-dense multiple of 128

    n_f = pl.cdiv(F, tile_f)
    # Larger parallel extent leads the grid -> balanced megacore split (v7x).
    if n_f >= B:
        grid = (n_f, B)
        x_map = lambda j, b: (b, 0, j)
    else:
        grid = (B, n_f)
        x_map = lambda b, j: (b, 0, j)
    wb_map = lambda *_: (0, 0)

    cost = pl.CostEstimate(
        flops=7 * B * C * F,
        transcendentals=B * F,
        bytes_accessed=2 * B * C * F * itemsize,
    )

    return pl.pallas_call(
        _cln_native_kernel,
        out_shape=jax.ShapeDtypeStruct((B, C, F), x.dtype),
        grid_spec=pltpu.PrefetchScalarGridSpec(
            num_scalar_prefetch=0,
            grid=grid,
            in_specs=[
                pl.BlockSpec((pl.Squeezed(), C, tile_f), x_map),
                pl.BlockSpec((C, 1), wb_map),
                pl.BlockSpec((C, 1), wb_map),
            ],
            out_specs=pl.BlockSpec((pl.Squeezed(), C, tile_f), x_map),
        ),
        compiler_params=pltpu.CompilerParams(
            dimension_semantics=("parallel", "parallel"),
            vmem_limit_bytes=vmem_limit,
        ),
        cost_estimate=cost,
    )(x, weight.reshape(C, 1), bias.reshape(C, 1))


def _cln_token_major(x, weight, bias, vmem_limit):
    # Small-F fallback: lane-dense over C instead of lane-sparse over F.
    # TODO(synk): the wrapper transpose/reshape adds HBM passes; a fully fused
    # in-kernel relayout would need a gather-style manual DMA.
    B, C, F = x.shape
    N = B * F
    itemsize = jnp.dtype(x.dtype).itemsize
    xt = jnp.transpose(x, (0, 2, 1)).reshape(N, C)

    wb_bytes = 2 * 2 * 8 * _round_up(C, 128) * 4
    budget = max(vmem_limit - wb_bytes - 2 * 1024 * 1024, 1 << 20)
    bytes_per_row = C * (4 * itemsize + 12)
    tile_n = max(8, budget // bytes_per_row // 8 * 8)
    tile_n = min(tile_n, N)
    if tile_n < N:
        tile_n = max(8, tile_n // 8 * 8)

    cost = pl.CostEstimate(
        flops=7 * N * C,
        transcendentals=N,
        bytes_accessed=2 * N * C * itemsize,
    )

    y = pl.pallas_call(
        _cln_token_kernel,
        out_shape=jax.ShapeDtypeStruct((N, C), x.dtype),
        grid_spec=pltpu.PrefetchScalarGridSpec(
            num_scalar_prefetch=0,
            grid=(pl.cdiv(N, tile_n),),
            in_specs=[
                pl.BlockSpec((tile_n, C), lambda i: (i, 0)),
                pl.BlockSpec((1, C), lambda i: (0, 0)),
                pl.BlockSpec((1, C), lambda i: (0, 0)),
            ],
            out_specs=pl.BlockSpec((tile_n, C), lambda i: (i, 0)),
        ),
        compiler_params=pltpu.CompilerParams(
            dimension_semantics=("parallel",),
            vmem_limit_bytes=vmem_limit,
        ),
        cost_estimate=cost,
    )(xt, weight.reshape(1, C), bias.reshape(1, C))
    return jnp.transpose(y.reshape(B, F, C), (0, 2, 1))


def channel_layer_norm(x, weight, bias, *, tile_f=None):
    """x: (B, C, F); weight, bias: (C,). Returns LayerNorm over C, shape (B, C, F)."""
    B, C, F = x.shape
    vmem_limit = _vmem_limit_bytes()
    if F >= 128:
        return _cln_native(x, weight, bias, vmem_limit, tile_f)
    return _cln_token_major(x, weight, bias, vmem_limit)


# --------------------------------------------------------------------------
# Reference + self-test
# --------------------------------------------------------------------------
def _reference(x, weight, bias):
    xt = jnp.transpose(x, (0, 2, 1)).astype(jnp.float32)  # (B, F, C)
    mean = jnp.mean(xt, axis=-1, keepdims=True)
    var = jnp.mean((xt - mean) ** 2, axis=-1, keepdims=True)
    y = (xt - mean) / jnp.sqrt(var + EPS) * weight + bias
    return jnp.transpose(y, (0, 2, 1)).astype(x.dtype)


if __name__ == "__main__":
    key = jax.random.PRNGKey(0)
    k1, k2 = jax.random.split(key)

    # dim = C = 32; input (B, C, F) as the module's forward expects.
    B, C, F = 2, 32, 16
    x = jax.random.normal(k1, (B, C, F), dtype=jnp.float32)
    weight = jnp.ones((C,), jnp.float32) + 0.01 * jnp.arange(C, dtype=jnp.float32)
    bias = jnp.zeros((C,), jnp.float32) + 0.001 * jnp.arange(C, dtype=jnp.float32)

    # F < 128 -> token-major lane-dense fallback path.
    out = jax.block_until_ready(channel_layer_norm(x, weight, bias))
    ref = _reference(x, weight, bias)
    assert out.shape == (B, C, F)
    assert jnp.allclose(out, ref, atol=1e-4, rtol=1e-4), "mismatch (token-major path)"

    # F >= 128 -> native lane-dense path; tile_f=128 forces a masked tail
    # block (200 = 128 + 72) and a multi-step grid.
    B2, C2, F2 = 2, 32, 200
    x2 = jax.random.normal(k2, (B2, C2, F2), dtype=jnp.float32)
    out2 = jax.block_until_ready(channel_layer_norm(x2, weight, bias, tile_f=128))
    ref2 = _reference(x2, weight, bias)
    assert out2.shape == (B2, C2, F2)
    assert jnp.allclose(out2, ref2, atol=1e-4, rtol=1e-4), "mismatch (native path)"

    # Native path with auto tile selection (no override).
    out3 = jax.block_until_ready(channel_layer_norm(x2, weight, bias))
    assert jnp.allclose(out3, ref2, atol=1e-4, rtol=1e-4), "mismatch (auto tile)"

    print("KERNEL_OK")
</pallas_src>

<mosaic_0001>
module attributes {stable_mosaic.version = 11 : i64} {
  func.func @_cln_token_kernel(%arg0: i32, %arg1: memref<32x32xf32, #tpu.memory_space<vmem>>, %arg2: memref<1x32xf32, #tpu.memory_space<vmem>>, %arg3: memref<1x32xf32, #tpu.memory_space<vmem>>, %arg4: memref<32x32xf32, #tpu.memory_space<vmem>>) attributes {dimension_semantics = [#tpu.dimension_semantics<parallel>], iteration_bounds = array<i64: 1>, scalar_prefetch = 0 : i64, scratch_operands = 0 : i64, tpu.core_type = #tpu.core_type<tc>, window_params = [{transform_indices = @transform_0, window_bounds = array<i64: 32, 32>}, {pipeline_mode = #tpu.pipeline_mode<synchronous>, transform_indices = @transform_1, window_bounds = array<i64: 1, 32>}, {pipeline_mode = #tpu.pipeline_mode<synchronous>, transform_indices = @transform_2, window_bounds = array<i64: 1, 32>}, {transform_indices = @transform_3, window_bounds = array<i64: 32, 32>}]} {
    %c0 = arith.constant 0 : index
    %c0_0 = arith.constant 0 : index
    %0 = vector.load %arg1[%c0, %c0_0] : memref<32x32xf32, #tpu.memory_space<vmem>>, vector<32x32xf32>
    %cst = arith.constant dense<0.000000e+00> : vector<32xf32>
    %1 = vector.multi_reduction <add>, %0, %cst [1] : vector<32x32xf32> to vector<32xf32>
    %2 = vector.shape_cast %1 : vector<32xf32> to vector<32x1xf32>
    %cst_1 = arith.constant 3.125000e-02 : f32
    %3 = vector.broadcast %cst_1 : f32 to vector<32x1xf32>
    %4 = arith.mulf %2, %3 : vector<32x1xf32>
    %5 = arith.mulf %0, %0 : vector<32x32xf32>
    %cst_2 = arith.constant dense<0.000000e+00> : vector<32xf32>
    %6 = vector.multi_reduction <add>, %5, %cst_2 [1] : vector<32x32xf32> to vector<32xf32>
    %7 = vector.shape_cast %6 : vector<32xf32> to vector<32x1xf32>
    %cst_3 = arith.constant 3.125000e-02 : f32
    %8 = vector.broadcast %cst_3 : f32 to vector<32x1xf32>
    %9 = arith.mulf %7, %8 : vector<32x1xf32>
    %10 = arith.mulf %4, %4 : vector<32x1xf32>
    %11 = arith.subf %9, %10 : vector<32x1xf32>
    %cst_4 = arith.constant 0.000000e+00 : f32
    %12 = vector.broadcast %cst_4 : f32 to vector<32x1xf32>
    %13 = arith.maximumf %11, %12 : vector<32x1xf32>
    %cst_5 = arith.constant 9.99999974E-6 : f32
    %14 = vector.broadcast %cst_5 : f32 to vector<32x1xf32>
    %15 = arith.addf %13, %14 : vector<32x1xf32>
    %16 = math.rsqrt %15 : vector<32x1xf32>
    %c0_6 = arith.constant 0 : index
    %c0_7 = arith.constant 0 : index
    %17 = vector.load %arg2[%c0_6, %c0_7] : memref<1x32xf32, #tpu.memory_space<vmem>>, vector<1x32xf32>
    %c0_8 = arith.constant 0 : index
    %c0_9 = arith.constant 0 : index
    %18 = vector.load %arg3[%c0_8, %c0_9] : memref<1x32xf32, #tpu.memory_space<vmem>>, vector<1x32xf32>
    %19 = vector.broadcast %4 : vector<32x1xf32> to vector<32x32xf32>
    %20 = arith.subf %0, %19 : vector<32x32xf32>
    %21 = vector.broadcast %16 : vector<32x1xf32> to vector<32x32xf32>
    %22 = arith.mulf %20, %21 : vector<32x32xf32>
    %23 = vector.broadcast %17 : vector<1x32xf32> to vector<32x32xf32>
    %24 = arith.mulf %22, %23 : vector<32x32xf32>
    %25 = vector.broadcast %18 : vector<1x32xf32> to vector<32x32xf32>
    %26 = arith.addf %24, %25 : vector<32x32xf32>
    %c0_10 = arith.constant 0 : index
    %c0_11 = arith.constant 0 : index
    %27 = vector.load %arg4[%c0_10, %c0_11] : memref<32x32xf32, #tpu.memory_space<vmem>>, vector<32x32xf32>
    tpu.vector_store %arg4[%c0_10, %c0_11], %26 {strides = array<i32>} : memref<32x32xf32, #tpu.memory_space<vmem>>, vector<32x32xf32>,
    return
  }
  func.func @transform_0(%arg0: i32) -> (i32, i32) {
    %c0_i32 = arith.constant 0 : i32
    %c0_i32_0 = arith.constant 0 : i32
    return %arg0, %c0_i32 : i32, i32
  }
  func.func @transform_1(%arg0: i32) -> (i32, i32) {
    %c0_i32 = arith.constant 0 : i32
    %c0_i32_0 = arith.constant 0 : i32
    %c0_i32_1 = arith.constant 0 : i32
    return %c0_i32, %c0_i32_0 : i32, i32
  }
  func.func @transform_2(%arg0: i32) -> (i32, i32) {
    %c0_i32 = arith.constant 0 : i32
    %c0_i32_0 = arith.constant 0 : i32
    %c0_i32_1 = arith.constant 0 : i32
    return %c0_i32, %c0_i32_0 : i32, i32
  }
  func.func @transform_3(%arg0: i32) -> (i32, i32) {
    %c0_i32 = arith.constant 0 : i32
    %c0_i32_0 = arith.constant 0 : i32
    return %arg0, %c0_i32 : i32, i32
  }
}

</mosaic_0001>

<bundles_post_ra>
// kernel: tpu_custom_call.1
= control target key start
LH: loop header
LB: loop body
LE: loop exit
PB: predicated region body
PF: predicated region fallthrough
CT: control target
= control target key end

     0   :  { %8 = vsyncpa [#allocation3], 0  ;;  %s377_s0 = inlined_call_operand.hbm [shape: f32[32,32], index: 0, kind: input, shape index: {}]   ;;  %s378_s1 = inlined_call_operand.hbm [shape: f32[1,32], index: 1, kind: input, shape index: {}]   ;;  %s379_s2 = inlined_call_operand.vmem [shape: f32[1,32], index: 2, kind: input, shape index: {}]   ;;  %s380_s3 = inlined_call_operand.hbm [shape: f32[32,32], index: 3, kind: output, shape index: {}]  }
   0x1   :  { %9 = vsyncpa [#allocation6], 0 }
   0x2   :  { %10 = vsyncpa [#allocation4], 0  ;;  %s15_s14 = sshll.u32 %s377_s0, 4  ;;  %s283_s15 = smov [#allocation2]   ;;  %s16_s14 = int_to_ptr.hbm [resolvable:$true] %s15_s14 }
   0x3   :  { %s17_s16 = sshll.u32 %s283_s15, 4  ;;  %s29_s19 = sshll.u32 %s378_s1, 4  ;;  %s18_s16 = int_to_ptr.vmem [resolvable:$true] %s17_s16  ;;  %s30_s19 = int_to_ptr.hbm [resolvable:$true] %s29_s19 }
   0x4   :  { %s284_s20 = smov 128   ;;  %s285_s21 = smov 8  }
   0x5   :  { %23 = dma.hbm_to_vmem [thread:$0]  %s16_s14, 512, %s18_s16, [#allocation3], %s284_s20, %s284_s20, %s285_s21  }
   0x6   :  { %s286_s22 = smov [#allocation5]  }
   0x7   :  { %s31_s23 = sshll.u32 %s286_s22, 4  ;;  %s32_s23 = int_to_ptr.vmem [resolvable:$true] %s31_s23 }
   0x8   :  { %34 = dma.hbm_to_vmem [thread:$0]  %s30_s19, 16, %s32_s23, [#allocation6]  }
   0x9   :  { %277 = dma.done.wait [#allocation3], 512  }
   0xa   :  { %278 = vsyncadd [#allocation3], 4294966784 }
   0xb   :  { %279 = dma.done.wait [#allocation6], 16  }
   0xc   :  { %280 = vsyncadd [#allocation6], 4294967280  ;;  %vm49_vm0 = vcmask 261120   ;;  %v317_v0 = vld [vmem:[#allocation2 + $0x10] sm:$0xff]  ;;  %v319_v1 = vld [vmem:[#allocation2] sm:$0xff]  ;;  %s176_s27 = sshll.u32 %s380_s3, 4  ;;  %s177_s27 = int_to_ptr.hbm [resolvable:$true] %s176_s27 }
   0xd   :  { %v56_v2 = vsel %vm49_vm0, %v317_v0, 0.0  ;;  %v50_v3 = vsel %vm49_vm0, %v319_v1, 0.0  ;;  %v66_v4 = vmul.f32 %v319_v1, %v319_v1  ;;  %v327_v5 = vld [vmem:[#allocation2 + $0x8] sm:$0xff]  ;;  %v330_v7 = vld [vmem:[#allocation2 + $0x18] sm:$0xff]  ;;  %v68_v13 = vmul.f32 %v317_v0, %v317_v0  ;;  %v195_v57 = vld [vmem:[#allocation5] ss:$0 sm:$0xff] }
   0xe   :  { %57 = vadd.xlane.f32.xlu1 %v56_v2  ;;  %51 = vadd.xlane.f32.xlu0 %v50_v3  ;;  %v67_v8 = vmul.f32 %v327_v5, %v327_v5  ;;  %v59_v9 = vsel %vm49_vm0, %v330_v7, 0.0  ;;  %v53_v10 = vsel %vm49_vm0, %v327_v5, 0.0  ;;  %v69_v12 = vmul.f32 %v330_v7, %v330_v7  ;;  %v196_v61 = vld [vmem:[%s379_s2] ss:$0 sm:$0xff]  ;;  %s287_s2 = smov [#allocation7]  }
   0xf   :  { %v70_v6 = vsel %vm49_vm0, %v66_v4, 0.0  ;;  %v76_v15 = vsel %vm49_vm0, %v68_v13, 0.0  ;;  %s174_s24 = sshll.u32 %s287_s2, 4  ;;  %s175_s24 = int_to_ptr.vmem [resolvable:$true] %s174_s24 }
  0x10   :  { %71 = vadd.xlane.f32.xlu2 %v70_v6  ;;  %v73_v11 = vsel %vm49_vm0, %v67_v8, 0.0  ;;  %v79_v14 = vsel %vm49_vm0, %v69_v12, 0.0 }
  0x16   :  { %60 = vadd.xlane.f32.xlu1 %v59_v9  ;;  %54 = vadd.xlane.f32.xlu0 %v53_v10 }
  0x18   :  { %74 = vadd.xlane.f32.xlu2 %v73_v11 }
  0x1e   :  { %80 = vadd.xlane.f32.xlu1 %v79_v14  ;;  %77 = vadd.xlane.f32.xlu0 %v76_v15 }
  0x81   :  { %v58_v16 = vpop.xlane.xlu1 %57  ;;  %v52_v17 = vpop.xlane.xlu0 %51 }
  0x82   :  { %v62_v18 = vmul.f32 0.03125, %v52_v17  ;;  %v349_v31 = vmul.f32 0.03125, %v58_v16 }
  0x83   :  { %v72_v19 = vpop.xlane.xlu2 %71 }
  0x84   :  { %v86_v20 = vmul.f32 %v62_v18, %v62_v18  ;;  %v82_v21 = vmul.f32 0.03125, %v72_v19  ;;  %v88_v37 = vmul.f32 %v349_v31, %v349_v31  ;;  %v144_v56 = vsub.f32 %v319_v1, %v62_v18 }
  0x86   :  { %v90_v22 = vsub.f32 %v82_v21, %v86_v20 }
  0x88   :  { %v94_v23 = vmax.f32 %v90_v22, 0.0 }
  0x89   :  { %v61_v24 = vpop.xlane.xlu1 %60  ;;  %v55_v25 = vpop.xlane.xlu0 %54 }
  0x8a   :  { %v345_v26 = vmul.f32 0.03125, %v55_v25  ;;  %v98_v27 = vadd.f32 1e-05, %v94_v23  ;;  %v351_v32 = vmul.f32 0.03125, %v61_v24 }
  0x8b   :  { %v75_v28 = vpop.xlane.xlu2 %74 }
  0x8c   :  { %v87_v29 = vmul.f32 %v345_v26, %v345_v26  ;;  %197 = vrsqrt.f32 %v98_v27  ;;  %v83_v30 = vmul.f32 0.03125, %v75_v28  ;;  %v89_v38 = vmul.f32 %v351_v32, %v351_v32 }
  0x8d   :  { %vm108_vm2 = vweird.f32 %v98_v27  ;;  %v145_v12 = vsub.f32 %v327_v5, %v345_v26  ;;  %v147_v21 = vsub.f32 %v330_v7, %v351_v32  ;;  %v146_v5 = vsub.f32 %v317_v0, %v349_v31 }
  0x8e   :  { %v91_v33 = vsub.f32 %v83_v30, %v87_v29 }
  0x90   :  { %v95_v34 = vmax.f32 %v91_v33, 0.0 }
  0x91   :  { %v81_v35 = vpop.xlane.xlu1 %80  ;;  %v78_v36 = vpop.xlane.xlu0 %77 }
  0x92   :  { %v85_v39 = vmul.f32 0.03125, %v81_v35  ;;  %v84_v40 = vmul.f32 0.03125, %v78_v36  ;;  %v198_v41 = vpop.eup %197  ;;  %v99_v42 = vadd.f32 1e-05, %v95_v34 }
  0x93   :  { %v103_v43 = vmul.f32 %v198_v41, %v98_v27  ;;  %vm109_vm1 = vweird.f32 %v198_v41 }
  0x94   :  { %v93_v44 = vsub.f32 %v85_v39, %v89_v38  ;;  %v92_v45 = vsub.f32 %v84_v40, %v88_v37  ;;  %199 = vrsqrt.f32 %v99_v42  ;;  %vm110_vm3 = vmor %vm108_vm2, %vm109_vm1  ;;  %vm118_vm5 = vweird.f32 %v99_v42 }
  0x95   :  { %v104_v46 = vmul.f32 %v198_v41, %v103_v43 }
  0x96   :  { %v97_v47 = vmax.f32 %v93_v44, 0.0  ;;  %v96_v48 = vmax.f32 %v92_v45, 0.0 }
  0x97   :  { %v105_v49 = vmul.f32 0.5, %v104_v46 }
  0x98   :  { %v101_v50 = vadd.f32 1e-05, %v97_v47  ;;  %v100_v51 = vadd.f32 1e-05, %v96_v48 }
  0x99   :  { %v106_v52 = vsub.f32 1.5, %v105_v49 }
  0x9a   :  { %201 = vrsqrt.f32 %v101_v50  ;;  %v200_v53 = vpop.eup %199  ;;  %vm138_vm9 = vweird.f32 %v101_v50  ;;  %vm128_vm11 = vweird.f32 %v100_v51 }
  0x9b   :  { %203 = vrsqrt.f32 %v100_v51  ;;  %v107_v54 = vmul.f32 %v198_v41, %v106_v52  ;;  %v113_v55 = vmul.f32 %v200_v53, %v99_v42  ;;  %vm119_vm4 = vweird.f32 %v200_v53 }
  0x9c   :  { %vm120_vm6 = vmor %vm118_vm5, %vm119_vm4 }
  0x9d   :  { %v111_v58 = vsel %vm110_vm3, %v198_v41, %v107_v54  ;;  %v114_v59 = vmul.f32 %v200_v53, %v113_v55 }
  0x9e   :  { %v148_v60 = vmul.f32 %v144_v56, %v111_v58 }
  0x9f   :  { %v115_v63 = vmul.f32 0.5, %v114_v59 }
  0xa0   :  { %v202_v62 = vpop.eup %201  ;;  %v155_v3 = vmul.f32 %v195_v57, %v148_v60 }
  0xa1   :  { %v204_v2 = vpop.eup %203  ;;  %v133_v4 = vmul.f32 %v202_v62, %v101_v50  ;;  %v116_v6 = vsub.f32 1.5, %v115_v63  ;;  %vm139_vm7 = vweird.f32 %v202_v62 }
  0xa2   :  { %v123_v8 = vmul.f32 %v204_v2, %v100_v51  ;;  %v162_v10 = vadd.f32 %v196_v61, %v155_v3  ;;  %vm129_vm8 = vweird.f32 %v204_v2  ;;  %vm140_vm10 = vmor %vm138_vm9, %vm139_vm7 }
  0xa3   :  { %v134_v9 = vmul.f32 %v202_v62, %v133_v4  ;;  %v117_v1 = vmul.f32 %v200_v53, %v116_v6  ;;  %vm130_vm12 = vmor %vm128_vm11, %vm129_vm8 }
  0xa4   :  { %v124_v11 = vmul.f32 %v204_v2, %v123_v8  ;;  %166 = vst.msk [vmem:[#allocation7] sm:$0xff] %vm49_vm0, %v162_v10 }
  0xa5   :  { %v135_v13 = vmul.f32 0.5, %v134_v9  ;;  %v121_v14 = vsel %vm120_vm6, %v200_v53, %v117_v1 }
  0xa6   :  { %v125_v15 = vmul.f32 0.5, %v124_v11  ;;  %v149_v16 = vmul.f32 %v145_v12, %v121_v14 }
  0xa7   :  { %v136_v17 = vsub.f32 1.5, %v135_v13 }
  0xa8   :  { %v126_v18 = vsub.f32 1.5, %v125_v15  ;;  %v156_v19 = vmul.f32 %v195_v57, %v149_v16 }
  0xa9   :  { %v137_v20 = vmul.f32 %v202_v62, %v136_v17 }
  0xaa   :  { %v127_v22 = vmul.f32 %v204_v2, %v126_v18  ;;  %v163_v23 = vadd.f32 %v196_v61, %v156_v19 }
  0xab   :  { %v141_v24 = vsel %vm140_vm10, %v202_v62, %v137_v20 }
  0xac   :  { %v151_v25 = vmul.f32 %v147_v21, %v141_v24  ;;  %v131_v26 = vsel %vm130_vm12, %v204_v2, %v127_v22  ;;  %167 = vst.msk [vmem:[#allocation7 + $0x8] sm:$0xff] %vm49_vm0, %v163_v23 }
  0xad   :  { %v150_v27 = vmul.f32 %v146_v5, %v131_v26 }
  0xae   :  { %v158_v28 = vmul.f32 %v195_v57, %v151_v25 }
  0xaf   :  { %v157_v7 = vmul.f32 %v195_v57, %v150_v27 }
  0xb0   :  { %v165_v29 = vadd.f32 %v196_v61, %v158_v28 }
  0xb1   :  { %v164_v30 = vadd.f32 %v196_v61, %v157_v7 }
  0xb2   :  { %169 = vst.msk [vmem:[#allocation7 + $0x18] sm:$0xff] %vm49_vm0, %v165_v29 }
  0xb3   :  { %168 = vst.msk [vmem:[#allocation7 + $0x10] sm:$0xff] %vm49_vm0, %v164_v30 }
  0xb4   :  { %182 = dma.vmem_to_hbm [thread:$0]  %s175_s24, 512, %s177_s27, [#allocation4], %s284_s20, %s284_s20, %s285_s21  }
  0xb5   :  { %281 = dma.done.wait [#allocation4], 512  }
  0xb6   :  { %282 = vsyncadd [#allocation4], 4294966784 }
  0xb7   :  { %187 = vsyncpa [#allocation3], 1 }
  0xb8   :  { %188 = vsyncpa [#allocation6], 1 }
  0xb9   :  { %189 = vsyncpa [#allocation4], 1 }

</bundles_post_ra>
